<compile_context>
chip_gen: v6e
topology: v6e:2x2x1
jax: 0.10.0
libtpu: 0.0.40
codegen_flags: <defaults>
</compile_context>

<pallas_src>
import itertools
import math

import jax
import jax.numpy as jnp
from jax.experimental import pallas as pl
from jax.experimental.pallas import tpu as pltpu


def _cdiv(a: int, b: int) -> int:
    return (a + b - 1) // b


# --------------------------------------------------------------------------
# Hardware-dependent defaults
# --------------------------------------------------------------------------
def _hw_config():
    """Returns (vmem_limit_bytes, lane_align, row_align) for this TPU."""
    cap = None
    kind = ""
    try:
        cap = int(pltpu.get_tpu_info().vmem_capacity_bytes)
    except Exception:
        cap = None
    try:
        kind = jax.devices()[0].device_kind.lower()
    except Exception:
        kind = ""
    if cap is None:
        cap = 64 * 1024 * 1024 if "v7" in kind else 128 * 1024 * 1024
    # ~96-100 MiB on 128-MiB v5e/v6e, ~48 MiB on 64-MiB v7x (headroom for
    # Mosaic internal scratch and the f32 matmul intermediate).
    vmem_limit = min(100 * 1024 * 1024, (cap * 3) // 4)
    if "v5" in kind:                 # 4x128^2 MXU: 128-aligned tiles suffice
        return vmem_limit, 128, 128
    return vmem_limit, 256, 256      # v6e / v7x: 2x256^2 MXU


# --------------------------------------------------------------------------
# Grid ordering / index-map helpers
# --------------------------------------------------------------------------
def _choose_order(parallel_axes, extents, streamed):
    """Pick a grid-axis order (reduction axis 'k' innermost).

    streamed: list of (dependence-axis-set, per-tile bytes) for the inputs.
    Minimises re-streamed HBM input traffic; avoids a size-1 leading parallel
    axis (v7x shards parallel grid axes across its 2 TensorCores).
    Returns (order, estimated_input_bytes).
    """
    best = None
    for perm in itertools.permutations(parallel_axes):
        order = tuple(perm) + ("k",)
        traffic = 0
        for deps, nbytes in streamed:
            live = [a for a in deps if extents[a] > 1]
            if not live:
                traffic += nbytes
                continue
            last = max(order.index(a) for a in live)
            fetches = 1
            for a in order[: last + 1]:
                fetches *= extents[a]
            traffic += fetches * nbytes
        degenerate_lead = int(
            extents[order[0]] == 1 and any(extents[a] > 1 for a in perm)
        )
        key = (degenerate_lead, traffic)
        if best is None or key < best[0]:
            best = (key, order, traffic)
    return best[1], best[2]


def _index_map(order, fn):
    def imap(*idx):
        return fn(dict(zip(order, idx)))
    return imap


# --------------------------------------------------------------------------
# Tile selection under a VMEM budget
# --------------------------------------------------------------------------
def _choose_row_k_tiles(rows, K, tile_nc, target_rows, row_align,
                        in_itemsize, out_itemsize, budget):
    """Pick (tile_rows, tile_k) under a VMEM budget.

    Working set = double-buffered x/w/out blocks + an f32 accumulator /
    matmul intermediate of the full output tile.  Keeps tile_rows >= 256 and
    prefers K-tiling (only exact 128-multiple divisors of K, so accumulation
    never reads out-of-bounds K columns) over shrinking the row tile.
    """
    def ws(tr, tk):
        return (2 * in_itemsize * (tr * tk + tk * tile_nc)
                + 2 * out_itemsize * tr * tile_nc
                + 4 * tr * tile_nc)

    if rows <= target_rows:
        row_cands = [rows]
    else:
        row_cands = []
        t = max(row_align, (target_rows // row_align) * row_align)
        floor = min(256, t)
        while t >= floor:
            row_cands.append(t)
            t -= row_align
        if not row_cands:
            row_cands = [row_align]

    tk_cands = [K]
    if K % 128 == 0:
        c = K - 128
        while c >= 128:
            if K % c == 0:
                tk_cands.append(c)
            c -= 128

    # Pass 1: keep the row tile >= 256 (or the full row extent); K-tile first.
    for tk in tk_cands:
        for tr in row_cands:
            if ws(tr, tk) <= budget:
                return tr, tk
    # Pass 2 (last resort): shrink the row tile below 256.
    for tk in tk_cands:
        tr = row_cands[-1]
        while tr > 8 and ws(tr, tk) > budget:
            tr = max(8, ((tr // 2) // 8) * 8)
        if ws(tr, tk) <= budget:
            return tr, tk
    return 8, tk_cands[-1]


# --------------------------------------------------------------------------
# Kernel bodies
# --------------------------------------------------------------------------
def _make_kernel_2d(num_k, k_axis):
    """Flat (tile_m, tile_nc) output tile; optional K-accumulation."""
    if num_k == 1:
        def kernel(x_ref, w_ref, o_ref):
            o_ref[...] = jnp.dot(
                x_ref[...], w_ref[...], preferred_element_type=jnp.float32
            ).astype(o_ref.dtype)
        return kernel

    def kernel(x_ref, w_ref, o_ref, acc_ref):
        k = pl.program_id(k_axis)

        @pl.when(k == 0)
        def _():
            acc_ref[...] = jnp.zeros_like(acc_ref)

        acc_ref[...] += jnp.dot(x_ref[...], w_ref[...],
                                preferred_element_type=jnp.float32)

        @pl.when(k == num_k - 1)
        def _():
            o_ref[...] = acc_ref[...].astype(o_ref.dtype)

    return kernel


def _make_kernel_grouped(num_k, k_axis, ng, out_dim):
    """Writes the (tile_n, ng*out_dim) matmul result straight into the
    (1, ng, tile_n, out_dim) output block: the N<->G transpose is realised by
    addressing (ng per-group stores, each lane-dense since out_dim % 128 == 0),
    so no post-kernel XLA transpose over the output is needed."""
    def _store(o_ref, acc):
        for g in range(ng):
            o_ref[0, g] = acc[:, g * out_dim:(g + 1) * out_dim].astype(o_ref.dtype)

    if num_k == 1:
        def kernel(x_ref, w_ref, o_ref):
            acc = jnp.dot(x_ref[0], w_ref[...],
                          preferred_element_type=jnp.float32)
            _store(o_ref, acc)
        return kernel

    def kernel(x_ref, w_ref, o_ref, acc_ref):
        k = pl.program_id(k_axis)

        @pl.when(k == 0)
        def _():
            acc_ref[...] = jnp.zeros_like(acc_ref)

        acc_ref[...] += jnp.dot(x_ref[0], w_ref[...],
                                preferred_element_type=jnp.float32)

        @pl.when(k == num_k - 1)
        def _():
            _store(o_ref, acc_ref[...])

    return kernel


# --------------------------------------------------------------------------
# pallas_call drivers
# --------------------------------------------------------------------------
def _qkv_call_grouped(x, w, B, N, K, G, out_dim, out_dtype,
                      tile_rows_target, tile_nc_target, row_align,
                      ib, ob, budget, vmem_limit_bytes):
    # Group tile: ng heads per step.  Use a divisor of G so the dominant
    # output axis never has masked boundary writes.
    ng = max(1, min(G, tile_nc_target // out_dim))
    while ng > 1 and G % ng:
        ng -= 1
    tile_nc = ng * out_dim                      # multiple of 128 by construction

    tile_n, tile_k = _choose_row_k_tiles(N, K, tile_nc, tile_rows_target,
                                         row_align, ib, ob, budget)
    gn, gg, gk = _cdiv(N, tile_n), G // ng, K // tile_k

    extents = {"b": B, "n": gn, "g": gg, "k": gk}
    order, in_bytes = _choose_order(
        ("b", "n", "g"), extents,
        [({"b", "n", "k"}, tile_n * tile_k * ib),
         ({"g", "k"}, tile_k * tile_nc * ib)])
    grid = tuple(extents[a] for a in order)
    k_axis = len(order) - 1

    # NOTE: if profiling shows exposed input DMA at large tiles, the
    # re-streamed input spec can take pipeline_mode=pl.Buffered(3).
    x_spec = pl.BlockSpec((1, tile_n, tile_k),
                          _index_map(order, lambda d: (d["b"], d["n"], d["k"])))
    w_spec = pl.BlockSpec((tile_k, tile_nc),
                          _index_map(order, lambda d: (d["k"], d["g"])))
    o_spec = pl.BlockSpec((1, ng, tile_n, out_dim),
                          _index_map(order,
                                     lambda d: (d["b"], d["g"], d["n"], 0)))

    scratch = [] if gk == 1 else [pltpu.VMEM((tile_n, tile_nc), jnp.float32)]
    kernel = _make_kernel_grouped(gk, k_axis, ng, out_dim)

    cost = pl.CostEstimate(
        flops=2 * B * N * K * G * out_dim,
        transcendentals=0,
        bytes_accessed=int(in_bytes + B * G * N * out_dim * ob))

    return pl.pallas_call(
        kernel,
        out_shape=jax.ShapeDtypeStruct((B, G, N, out_dim), out_dtype),
        grid_spec=pltpu.PrefetchScalarGridSpec(
            num_scalar_prefetch=0,
            grid=grid,
            in_specs=[x_spec, w_spec],
            out_specs=o_spec,
            scratch_shapes=scratch),
        compiler_params=pltpu.CompilerParams(
            dimension_semantics=tuple(
                "arbitrary" if a == "k" else "parallel" for a in order),
            vmem_limit_bytes=int(vmem_limit_bytes)),
        cost_estimate=cost,
    )(x, w)


def _qkv_call_2d(x2d, w, M, K, Nc, out_dtype,
                 tile_rows_target, tile_nc_target, lane_align, row_align,
                 ib, ob, budget, vmem_limit_bytes):
    if Nc <= max(tile_nc_target, lane_align):
        tile_nc = Nc                                   # full dim -> always legal
    else:
        tile_nc = max(lane_align, (tile_nc_target // lane_align) * lane_align)
        t = tile_nc                                    # prefer a divisor of Nc
        while t > lane_align and Nc % t:
            t -= lane_align
        if Nc % t == 0:
            tile_nc = t
    gc = _cdiv(Nc, tile_nc)

    tile_m, tile_k = _choose_row_k_tiles(M, K, tile_nc, tile_rows_target,
                                         row_align, ib, ob, budget)
    gm, gk = _cdiv(M, tile_m), K // tile_k

    extents = {"m": gm, "c": gc, "k": gk}
    order, in_bytes = _choose_order(
        ("m", "c"), extents,
        [({"m", "k"}, tile_m * tile_k * ib),
         ({"c", "k"}, tile_k * tile_nc * ib)])
    grid = tuple(extents[a] for a in order)
    k_axis = len(order) - 1

    x_spec = pl.BlockSpec((tile_m, tile_k),
                          _index_map(order, lambda d: (d["m"], d["k"])))
    w_spec = pl.BlockSpec((tile_k, tile_nc),
                          _index_map(order, lambda d: (d["k"], d["c"])))
    o_spec = pl.BlockSpec((tile_m, tile_nc),
                          _index_map(order, lambda d: (d["m"], d["c"])))

    scratch = [] if gk == 1 else [pltpu.VMEM((tile_m, tile_nc), jnp.float32)]
    kernel = _make_kernel_2d(gk, k_axis)

    cost = pl.CostEstimate(flops=2 * M * K * Nc, transcendentals=0,
                           bytes_accessed=int(in_bytes + M * Nc * ob))

    return pl.pallas_call(
        kernel,
        out_shape=jax.ShapeDtypeStruct((M, Nc), out_dtype),
        grid_spec=pltpu.PrefetchScalarGridSpec(
            num_scalar_prefetch=0,
            grid=grid,
            in_specs=[x_spec, w_spec],
            out_specs=o_spec,
            scratch_shapes=scratch),
        compiler_params=pltpu.CompilerParams(
            dimension_semantics=tuple(
                "arbitrary" if a == "k" else "parallel" for a in order),
            vmem_limit_bytes=int(vmem_limit_bytes)),
        cost_estimate=cost,
    )(x2d, w)


# --------------------------------------------------------------------------
# Public API
# --------------------------------------------------------------------------
def fuse_qkv_weight(weight):
    """(3*headNum, inDim, outDim) -> fused (inDim, 3*headNum*outDim).

    Call ONCE at parameter-init / load time and pass the fused weight to
    qkv_transform so the weight transpose is off the hot path.
    """
    G, K, o = weight.shape
    return jnp.transpose(weight, (1, 0, 2)).reshape(K, G * o)


def qkv_transform(feature_vec, weight, head_num, *,
                  compute_dtype=None, out_dtype=None,
                  tile_rows_target=1024, tile_nc_target=1024,
                  vmem_limit_bytes=None):
    """QKVTransform.forward.

    feature_vec: (B, N, inDim)
    weight:      (3*headNum, inDim, outDim), or (preferred) the pre-fused
                 (inDim, 3*headNum*outDim) layout from fuse_qkv_weight().
    Returns (B, headNum, 3, N, outDim), matching the PyTorch module.

    compute_dtype=jnp.bfloat16 halves input/weight HBM traffic on v6e/v7x
    (accumulation stays f32); out_dtype=jnp.bfloat16 additionally halves the
    dominant output traffic if the consumer accepts it.
    """
    B, N, in_dim = feature_vec.shape
    G = 3 * head_num

    if weight.ndim == 3:
        gw, kw, out_dim = weight.shape
        assert gw == G and kw == in_dim
        w_fused = fuse_qkv_weight(weight)     # prefer pre-fusing at init time
    else:
        kw, nc = weight.shape
        assert kw == in_dim and nc % G == 0
        out_dim = nc // G
        w_fused = weight
    K, Nc, M = in_dim, G * out_dim, B * N

    if compute_dtype is None:
        compute_dtype = feature_vec.dtype
    if out_dtype is None:
        out_dtype = feature_vec.dtype
    ib = jnp.dtype(compute_dtype).itemsize
    ob = jnp.dtype(out_dtype).itemsize

    default_vmem, lane_align, row_align = _hw_config()
    if vmem_limit_bytes is None:
        vmem_limit_bytes = default_vmem
    budget = int(vmem_limit_bytes * 0.7)

    x = feature_vec if feature_vec.dtype == compute_dtype \
        else feature_vec.astype(compute_dtype)
    w = w_fused if w_fused.dtype == compute_dtype \
        else w_fused.astype(compute_dtype)

    if out_dim % 128 == 0:
        # Transpose folded into the kernel: output is already (B, G, N, o).
        out4 = _qkv_call_grouped(x, w, B, N, K, G, out_dim, out_dtype,
                                 tile_rows_target, tile_nc_target, row_align,
                                 ib, ob, budget, vmem_limit_bytes)
        return out4.reshape(B, head_num, 3, N, out_dim)

    # Fallback: lane-dense 2-D kernel output + one XLA transpose.
    # TODO(synk): if the consumer can accept a (B, N, headNum, 3, outDim)
    # layout, drop this transpose (it re-reads/re-writes the whole output).
    out2d = _qkv_call_2d(x.reshape(M, K), w, M, K, Nc, out_dtype,
                         tile_rows_target, tile_nc_target, lane_align,
                         row_align, ib, ob, budget, vmem_limit_bytes)
    out = out2d.reshape(B, N, G, out_dim).transpose(0, 2, 1, 3)
    return out.reshape(B, head_num, 3, N, out_dim)


def init_qkv_weight(key, head_num, in_dim, out_dim, gain=1.414,
                    dtype=jnp.float32):
    # xavier_uniform: U(-a, a) with a = gain * sqrt(6 / (fan_in + fan_out))
    bound = gain * math.sqrt(6.0 / (in_dim + out_dim))
    return jax.random.uniform(key, (3 * head_num, in_dim, out_dim),
                              dtype=dtype, minval=-bound, maxval=bound)


# --------------------------------------------------------------------------
# Self-test
# --------------------------------------------------------------------------
if __name__ == "__main__":
    key = jax.random.PRNGKey(0)
    k1, k2, k3, k4, k5, k6 = jax.random.split(key, 6)

    # 1) Toy config (out_dim not 128-aligned -> lane-dense 2-D fallback path;
    #    also exercises the 3-D-weight convenience path).
    B, N, head_num, in_dim, out_dim = 2, 8, 2, 32, 32
    x = jax.random.normal(k1, (B, N, in_dim), dtype=jnp.float32)
    w = init_qkv_weight(k2, head_num, in_dim, out_dim)
    out = jax.block_until_ready(qkv_transform(x, w, head_num))
    ref = jnp.einsum("bni,gio->bgno", x, w).reshape(B, head_num, 3, N, out_dim)
    assert out.shape == (B, head_num, 3, N, out_dim)
    assert jnp.allclose(out, ref, atol=1e-5, rtol=1e-5)

    # 2) 128-aligned out_dim -> transpose folded into the kernel output;
    #    weight pre-fused once (recommended hot-path usage).
    B2, N2, hn2, in2, o2 = 2, 256, 2, 128, 128
    x2 = jax.random.normal(k3, (B2, N2, in2), dtype=jnp.float32)
    w2_full = init_qkv_weight(k4, hn2, in2, o2)
    w2 = fuse_qkv_weight(w2_full)                     # one-time weight prep
    out2 = jax.block_until_ready(qkv_transform(x2, w2, hn2))
    ref2 = jnp.einsum("bni,gio->bgno", x2, w2_full,
                      precision=jax.lax.Precision.HIGHEST
                      ).reshape(B2, hn2, 3, N2, o2)
    assert out2.shape == ref2.shape
    assert jnp.allclose(out2, ref2, atol=2e-2, rtol=2e-2)

    # 3) Artificially small VMEM limit -> exercises the K-tiled accumulator
    #    path (grid_k > 1) and multi-tile N on the fused-layout output.
    B3, N3, hn3, in3, o3 = 1, 256, 2, 512, 128
    x3 = jax.random.normal(k5, (B3, N3, in3), dtype=jnp.float32)
    w3_full = init_qkv_weight(k6, hn3, in3, o3)
    w3 = fuse_qkv_weight(w3_full)
    out3 = jax.block_until_ready(
        qkv_transform(x3, w3, hn3, vmem_limit_bytes=4 * 1024 * 1024))
    ref3 = jnp.einsum("bni,gio->bgno", x3, w3_full,
                      precision=jax.lax.Precision.HIGHEST
                      ).reshape(B3, hn3, 3, N3, o3)
    assert out3.shape == ref3.shape
    assert jnp.allclose(out3, ref3, atol=2e-2, rtol=2e-2)

    print("KERNEL_OK")
</pallas_src>

<mosaic_0001>
module attributes {stable_mosaic.version = 11 : i64} {
  func.func @kernel(%arg0: i32, %arg1: i32, %arg2: i32, %arg3: memref<16x32xf32, #tpu.memory_space<vmem>>, %arg4: memref<32x192xf32, #tpu.memory_space<vmem>>, %arg5: memref<16x192xf32, #tpu.memory_space<vmem>>) attributes {dimension_semantics = [#tpu.dimension_semantics<parallel>, #tpu.dimension_semantics<parallel>, #tpu.dimension_semantics<arbitrary>], iteration_bounds = array<i64: 1, 1, 1>, scalar_prefetch = 0 : i64, scratch_operands = 0 : i64, tpu.core_type = #tpu.core_type<tc>, window_params = [{transform_indices = @transform_0, window_bounds = array<i64: 16, 32>}, {transform_indices = @transform_1, window_bounds = array<i64: 32, 192>}, {transform_indices = @transform_2, window_bounds = array<i64: 16, 192>}]} {
    %c0 = arith.constant 0 : index
    %c0_0 = arith.constant 0 : index
    %0 = vector.load %arg3[%c0, %c0_0] : memref<16x32xf32, #tpu.memory_space<vmem>>, vector<16x32xf32>
    %c0_1 = arith.constant 0 : index
    %c0_2 = arith.constant 0 : index
    %1 = vector.load %arg4[%c0_1, %c0_2] : memref<32x192xf32, #tpu.memory_space<vmem>>, vector<32x192xf32>
    %cst = arith.constant dense<0.000000e+00> : vector<16x192xf32>
    %2 = tpu.matmul %0, %1, %cst {dimension_numbers = #tpu.dot_dimension_numbers<[1], [0], [0], [1], [0, 0, 1, 1], [], []>} : vector<16x32xf32>, vector<32x192xf32>, vector<16x192xf32> -> vector<16x192xf32>
    %c0_3 = arith.constant 0 : index
    %c0_4 = arith.constant 0 : index
    %3 = vector.load %arg5[%c0_3, %c0_4] : memref<16x192xf32, #tpu.memory_space<vmem>>, vector<16x192xf32>
    tpu.vector_store %arg5[%c0_3, %c0_4], %2 {strides = array<i32>} : memref<16x192xf32, #tpu.memory_space<vmem>>, vector<16x192xf32>,
    return
  }
  func.func @transform_0(%arg0: i32, %arg1: i32, %arg2: i32) -> (i32, i32) {
    %c0_i32 = arith.constant 0 : i32
    return %arg0, %arg2 : i32, i32
  }
  func.func @transform_1(%arg0: i32, %arg1: i32, %arg2: i32) -> (i32, i32) {
    %c0_i32 = arith.constant 0 : i32
    return %arg2, %arg1 : i32, i32
  }
  func.func @transform_2(%arg0: i32, %arg1: i32, %arg2: i32) -> (i32, i32) {
    %c0_i32 = arith.constant 0 : i32
    return %arg0, %arg1 : i32, i32
  }
}

</mosaic_0001>

<bundles_post_ra>
// kernel: tpu_custom_call.1
= control target key start
LH: loop header
LB: loop body
LE: loop exit
PB: predicated region body
PF: predicated region fallthrough
CT: control target
= control target key end

     0   :  { %7 = vsyncpa [#allocation3], 0  ;;  %s279_s0 = inlined_call_operand.hbm [shape: f32[16,32], index: 0, kind: input, shape index: {}]   ;;  %s280_s1 = inlined_call_operand.hbm [shape: f32[32,192], index: 1, kind: input, shape index: {}]   ;;  %s281_s2 = inlined_call_operand.hbm [shape: f32[16,192], index: 2, kind: output, shape index: {}]  }
   0x1   :  { %8 = vsyncpa [#allocation6], 0 }
   0x2   :  { %9 = vsyncpa [#allocation4], 0  ;;  %s241_s9 = smov [#allocation2]  }
   0x3   :  { %s15_s10 = sshll.u32 %s241_s9, 4  ;;  %s16_s10 = int_to_ptr.vmem [resolvable:$true] %s15_s10 }
   0x4   :  { %s183_s11 = scalar_lea.vmem %s16_s10, 256  ;;  %p188_p1 = scmp.lt.s32.totalorder %s16_s10, %s16_s10 }
   0x5   :  { %p184_p0 = scmp.ne.s32.totalorder %s16_s10, %s183_s11  ;;  %p189_p2 = scmp.lt.s32.totalorder %s183_s11, %s183_s11 }
   0x7   :  { %p190_p3 = por %p189_p2, %p188_p1 }
   0x9   :  { %p191_p4 = pnand %p190_p3, %p184_p0 }
   0xb   :  { %194 = shalt.err (!%p191_p4)
}
   0xc   :  { %s242_s12 = smov 128   ;;  %s243_s13 = smov 8  }
   0xd   :  { %21 = dma.hbm_to_vmem [thread:$0]  %s279_s0, 256, %s16_s10, [#allocation3], %s242_s12, %s242_s12, %s243_s13  }
   0xe   :  { %s244_s16 = smov [#allocation5]  }
   0xf   :  { %s27_s17 = sshll.u32 %s244_s16, 4  ;;  %s28_s17 = int_to_ptr.vmem [resolvable:$true] %s27_s17 }
  0x10   :  { %s203_s18 = scalar_lea.vmem %s28_s17, 1024  ;;  %p208_p6 = scmp.lt.s32.totalorder %s28_s17, %s28_s17 }
  0x11   :  { %p204_p5 = scmp.ne.s32.totalorder %s28_s17, %s203_s18  ;;  %p209_p7 = scmp.lt.s32.totalorder %s203_s18, %s203_s18 }
  0x13   :  { %p210_p8 = por %p209_p7, %p208_p6 }
  0x15   :  { %p211_p9 = pnand %p210_p8, %p204_p5 }
  0x17   :  { %214 = shalt.err (!%p211_p9)
}
  0x18   :  { %s245_s19 = smov 256   ;;  %s246_s20 = smov 16  }
  0x19   :  { %33 = dma.hbm_to_vmem [thread:$0]  %s280_s1, 1024, %s28_s17, [#allocation6], %s245_s19, %s245_s19, %s246_s20  }
  0x1a   :  { %235 = dma.done.wait [#allocation3], 256  }
  0x1b   :  { %236 = vsyncadd [#allocation3], 4294967040 }
  0x1c   :  { %237 = dma.done.wait [#allocation6], 1024  }
  0x1d   :  { %238 = vsyncadd [#allocation6], 4294966272  ;;  %v247_v0 = vmov 0.0   ;;  %v49_v1 = vld [vmem:[#allocation5 + $0x38] sm:$0xff]  ;;  %v48_v2 = vld [vmem:[#allocation5 + $0x30] sm:$0xff]  ;;  %vm50_vm0 = vcmask 261120  }
  0x1e   :  { %121 = vmatprep.mubr.f32.mxu0 %v247_v0  ;;  %127 = vmatprep.mubr.f32.mxu1 %v247_v0  ;;  %v47_v3 = vld [vmem:[#allocation5 + $0x28] sm:$0xff]  ;;  %v46_v4 = vld [vmem:[#allocation5 + $0x20] sm:$0xff]  ;;  %v45_v5 = vld [vmem:[#allocation5 + $0x18] sm:$0xff]  ;;  %s248_s0 = smov [#allocation7]   ;;  %vm135_vm1 = vcmask 523264  }
  0x1f   :  { %81 = vmatprep.subr.mxu0 %v49_v1  ;;  %159 = vmatprep.subr.mxu1 %v49_v1  ;;  %v44_v6 = vld [vmem:[#allocation5 + $0x10] sm:$0xff]  ;;  %v43_v7 = vld [vmem:[#allocation5 + $0x8] sm:$0xff]  ;;  %v42_v8 = vld [vmem:[#allocation5] sm:$0xff]  ;;  %s144_s1 = sshll.u32 %s248_s0, 4  ;;  %s145_s1 = int_to_ptr.vmem [resolvable:$true] %s144_s1 }
  0x20   :  { %82 = vmatpush1.msra.mxu0 %v48_v2  ;;  %163 = vmatpush1.msra.mxu1 %v48_v2  ;;  %v40_v9 = vld [vmem:[#allocation2] sm:$0xff]  ;;  %v41_v10 = vld [vmem:[#allocation2 + $0x8] sm:$0xff]  ;;  %s215_s23 = scalar_lea.vmem %s145_s1, 512  ;;  %p220_p11 = scmp.lt.s32.totalorder %s145_s1, %s145_s1 }
  0x21   :  { %83 = vmatprep.subr.mxu0 %v47_v3  ;;  %160 = vmatprep.subr.mxu1 %v47_v3  ;;  %p216_p10 = scmp.ne.s32.totalorder %s145_s1, %s215_s23  ;;  %p221_p12 = scmp.lt.s32.totalorder %s215_s23, %s215_s23 }
  0x22   :  { %84 = vmatpush1.msra.mxu0 %v46_v4  ;;  %164 = vmatpush1.msra.mxu1 %v46_v4 }
  0x23   :  { %85 = vmatprep.subr.mxu0 %v45_v5  ;;  %161 = vmatprep.subr.mxu1 %v45_v5  ;;  %p222_p13 = por %p221_p12, %p220_p11 }
  0x24   :  { %86 = vmatpush1.msra.mxu0 %v44_v6  ;;  %165 = vmatpush1.msra.mxu1 %v44_v6 }
  0x25   :  { %87 = vmatprep.subr.mxu0 %v43_v7  ;;  %162 = vmatprep.subr.mxu1 %v43_v7  ;;  %p223_p0 = pnand %p222_p13, %p216_p10 }
  0x26   :  { %88 = vmatpush1.msra.mxu0 %v42_v8  ;;  %166 = vmatpush1.msra.mxu1 %v42_v8 }
  0x27   :  { %157 = vmatmul.mubr.msk.f32.vlgmr.msra.gmra.mxu0 %vm50_vm0, %v40_v9  ;;  %158 = vmatmul.mubr.msk.f32.vlgmr.msra.gmra.mxu1 %vm50_vm0, %v41_v10 }
  0xe7   :  { %v123_v11 = vpop.f32.mrf.mxu0  ;;  %v129_v12 = vpop.f32.mrf.mxu1 }
  0xe8   :  { %134 = vst [vmem:[#allocation7] sm:$0xff] %v123_v11  ;;  %137 = vst [vmem:[#allocation7 + $0x10] sm:$0xff] %v129_v12 }
  0xe9   :  { %v125_v13 = vpop.f32.mrf.mxu0  ;;  %v131_v14 = vpop.f32.mrf.mxu1 }
  0xea   :  { %136 = vst.msk [vmem:[#allocation7 + $0x8] sm:$0xff] %vm135_vm1, %v125_v13  ;;  %138 = vst.msk [vmem:[#allocation7 + $0x18] sm:$0xff] %vm135_vm1, %v131_v14 }
  0xeb   :  { %226 = shalt.err (!%p223_p0)
}
  0xec   :  { %150 = dma.vmem_to_hbm [thread:$0]  %s145_s1, 512, %s281_s2, [#allocation4], %s245_s19, %s245_s19, %s246_s20  }
  0xed   :  { %239 = dma.done.wait [#allocation4], 512  }
  0xee   :  { %240 = vsyncadd [#allocation4], 4294966784 }
  0xef   :  { %154 = vsyncpa [#allocation3], 1 }
  0xf0   :  { %155 = vsyncpa [#allocation6], 1 }
  0xf1   :  { %156 = vsyncpa [#allocation4], 1 }

</bundles_post_ra>
